<compile_context>
chip_gen: v6e
topology: v6e:2x2x1
jax: 0.10.0
libtpu: 0.0.40
codegen_flags: <defaults>
</compile_context>

<pallas_src>
import functools

import jax
import jax.numpy as jnp
from jax.experimental import pallas as pl
from jax.experimental.pallas import tpu as pltpu


def _pass1_kernel(x_i_ref, x_j_ref, u_pos_ref, u_neg_ref,
                  w_ref, beta_ref, wgc_ref, part_ref):
    """Per-batch-tile partials. Inputs (TB, D); params (1, D); output (3, TB).

    The final grid step may cover rows >= B; those rows hold unspecified data
    and produce garbage lanes in the slab, which pass 2 masks out.
    """
    w = w_ref[...]        # (1, D)
    beta = beta_ref[...]  # (1, D)
    wgc = wgc_ref[...]    # (1, D) = weight^2 * w_pw * w_gamma (folded in wrapper)

    x_i = x_i_ref[...]    # (TB, D)
    x_j = x_j_ref[...]    # (TB, D)

    # weighted pos/neg centroid difference, folded with `weight` once
    wd = (u_pos_ref[...] - u_neg_ref[...] * beta) * w        # (TB, D)

    # reduce each (TB, D) product immediately -> few live intermediates
    si = jnp.sum(x_i * wd, axis=1)                           # (TB,)
    sj = jnp.sum(x_j * wd, axis=1)                           # (TB,)
    mws = jnp.sum((x_i * x_j) * wgc, axis=1)                 # (TB,)

    # lane-dense stores: batch sits on the lane axis of the (3, TB) slab
    part_ref[0:1, :] = mws[None, :]
    part_ref[1:2, :] = si[None, :]
    part_ref[2:3, :] = sj[None, :]


def _pass2_kernel(part_ref, out_ref, *, num_valid):
    """Full-batch softmax + adaptive combine. part (3, Bp) -> out (2, Bp)."""
    part = part_ref[...]                  # (3, Bp)
    mws = part[0:1, :]                    # (1, Bp)
    si = part[1:2, :]                     # (1, Bp)
    sj = part[2:3, :]                     # (1, Bp)

    bp = mws.shape[1]
    valid = jax.lax.broadcasted_iota(jnp.int32, (1, bp), 1) < num_valid

    # batch-axis softmax restricted to valid (non-tail) rows.
    # NOTE: -1e30 mask constant is only safe while the slab stays f32.
    mws_m = jnp.where(valid, mws, -1e30)
    m = jnp.max(mws_m, axis=1, keepdims=True)                # (1, 1)
    e = jnp.where(valid, jnp.exp(mws_m - m), 0.0)            # (1, Bp)
    gamma = e / jnp.sum(e, axis=1, keepdims=True)            # (1, Bp)

    xvd = si - gamma * sj                                    # (1, Bp)
    out_ref[0:1, :] = xvd
    out_ref[1:2, :] = jax.nn.sigmoid(xvd)


def _round_up(x, m):
    return ((x + m - 1) // m) * m


def _vmem_budget_bytes():
    """~3/4 of physical per-core VMEM: ~48 MiB on v7x, ~96 MiB on v5e/v6e."""
    cap = 64 * 1024 * 1024  # conservative fallback (v7x-sized)
    try:
        info = pltpu.get_tpu_info()
        cap = int(getattr(info, "vmem_capacity_bytes", cap))
    except Exception:
        pass
    return (cap * 3) // 4


def _pick_tile_batch(B, D, budget_bytes):
    """Largest 128-multiple batch tile that fits the double-buffered budget."""
    # double-buffered f32 bytes per batch row:
    #   4 inputs * 2 buffers * D * 4B  +  (3, tb) output slab double-buffered
    per_row = 4 * 2 * D * 4 + 2 * 3 * 4
    tb = budget_bytes // per_row
    tb = max(128, (tb // 128) * 128)
    tb = min(tb, 4096)                # diminishing returns beyond ~2-4K rows/step
    tb = min(tb, _round_up(B, 128))   # never larger than the (padded) batch
    if B > 128:
        # guarantee >= 2 grid steps so the "parallel" axis can shard across
        # both v7x TensorCores (harmless on 1-TC v5e/v6e)
        tb = min(tb, _round_up(pl.cdiv(B, 2), 128))
    return tb
    # TODO(synk): for item_dim so large that even tb=128 exceeds the budget,
    # add a D grid axis ("arbitrary") with a (3, tb) VMEM accumulator instead
    # of shrinking tb further.


def adaptive_pointwise_pairwise(x_i, x_j, u_pos, u_neg,
                                weight, beta, w_gamma, w_pw,
                                *, tile_batch=None):
    """Train-mode forward (batch_norm=False).

    Inputs (B, D) float32; params (D,) float32. Returns (xvd (B,1), probs (B,1)).
    """
    B, D = x_i.shape

    budget = _vmem_budget_bytes()
    if tile_batch is None:
        tb = _pick_tile_batch(B, D, budget)
    else:
        assert tile_batch % 128 == 0, "tile_batch must be a multiple of 128"
        tb = min(tile_batch, _round_up(B, 128))

    steps = pl.cdiv(B, tb)
    bp = steps * tb   # padded batch extent; only the tiny slabs use it

    # (1, D) parameter rows; fold weight^2 * w_pw * w_gamma once (O(D) work)
    w2 = weight.reshape(1, D)
    b2 = beta.reshape(1, D)
    wgc2 = (weight * weight * w_pw * w_gamma).reshape(1, D)

    mat_spec = pl.BlockSpec((tb, D), lambda i: (i, 0))
    par_spec = pl.BlockSpec((1, D), lambda i: (0, 0))
    part_spec = pl.BlockSpec((3, tb), lambda i: (0, i))

    # pass 1: batch-tiled, auto double-buffered, sharded across TensorCores.
    # No input padding: the final partial tile reads only the valid rows; its
    # garbage tail lanes in the (3, bp) slab are masked in pass 2.
    partials = pl.pallas_call(
        _pass1_kernel,
        out_shape=jax.ShapeDtypeStruct((3, bp), jnp.float32),
        grid=(steps,),
        in_specs=[mat_spec, mat_spec, mat_spec, mat_spec,
                  par_spec, par_spec, par_spec],
        out_specs=part_spec,
        compiler_params=pltpu.CompilerParams(
            dimension_semantics=("parallel",),
            vmem_limit_bytes=int(budget)),
    )(x_i, x_j, u_pos, u_neg, w2, b2, wgc2)

    # pass 2: tiny full-batch softmax / combine / sigmoid on (3, bp).
    # TODO(synk): tile this (two-stage max/sum) if B ever approaches ~1.5M rows
    # (the single (3,bp)+(2,bp) block would near v7x's 64 MiB VMEM).
    out2 = pl.pallas_call(
        functools.partial(_pass2_kernel, num_valid=B),
        out_shape=jax.ShapeDtypeStruct((2, bp), jnp.float32),
        grid=(),
        in_specs=[pl.BlockSpec((3, bp), lambda: (0, 0))],
        out_specs=pl.BlockSpec((2, bp), lambda: (0, 0)),
    )(partials)

    xvd = out2[0, :B][:, None]     # (B, 1)
    probs = out2[1, :B][:, None]   # (B, 1)
    return xvd, probs


def _reference(x_i, x_j, u_pos, u_neg, weight, beta, w_gamma, w_pw):
    diff = u_pos - u_neg * beta
    xv_i = x_i * weight
    xv_j = x_j * weight
    xvd_i = xv_i * diff
    xvd_j = xv_j * diff
    mws = ((xv_i * w_pw) * xv_j) @ w_gamma
    gamma = jax.nn.softmax(mws, axis=0)
    xvd = xvd_i.sum(1) - gamma * xvd_j.sum(1)
    return xvd[:, None], jax.nn.sigmoid(xvd)[:, None]


if __name__ == "__main__":
    B, D = 200, 128  # batch_size, item_dim (small; exercises a partial tile)

    key = jax.random.PRNGKey(0)
    k1, k2, k3, k4, kb = jax.random.split(key, 5)
    x_i = jax.random.normal(k1, (B, D), dtype=jnp.float32)
    x_j = jax.random.normal(k2, (B, D), dtype=jnp.float32)
    u_pos = jax.random.normal(k3, (B, D), dtype=jnp.float32)
    u_neg = jax.random.normal(k4, (B, D), dtype=jnp.float32)

    # parameter init mirroring the module's __init__:
    #   weight = ones(D); w_gamma = ones(D); w_pw = ones(D)
    #   beta   ~ Normal(0, 0.02)  (beta_init=False path, nn.init.normal_)
    weight = jnp.ones((D,), dtype=jnp.float32)
    w_gamma = jnp.ones((D,), dtype=jnp.float32)
    w_pw = jnp.ones((D,), dtype=jnp.float32)
    beta = 0.02 * jax.random.normal(kb, (D,), dtype=jnp.float32)

    # auto tile selection: for B=200 this picks tb=128 -> 2 grid steps with a
    # partial last tile, exercising the no-pad path and pass-2 masking
    out, probs = adaptive_pointwise_pairwise(
        x_i, x_j, u_pos, u_neg, weight, beta, w_gamma, w_pw)
    jax.block_until_ready((out, probs))

    ref_out, ref_probs = _reference(
        x_i, x_j, u_pos, u_neg, weight, beta, w_gamma, w_pw)
    assert out.shape == (B, 1) and probs.shape == (B, 1)
    assert jnp.allclose(out, ref_out, atol=1e-4, rtol=1e-4)
    assert jnp.allclose(probs, ref_probs, atol=1e-4, rtol=1e-4)

    # TODO(synk): params.batch_norm=True path (nn.BatchNorm1d) not implemented;
    # this kernel covers the batch_norm=False configuration.
    print("KERNEL_OK")
</pallas_src>

<mosaic_0001>
module attributes {stable_mosaic.version = 11 : i64} {
  func.func @_pass1_kernel(%arg0: i32, %arg1: memref<128x128xf32, #tpu.memory_space<vmem>>, %arg2: memref<128x128xf32, #tpu.memory_space<vmem>>, %arg3: memref<128x128xf32, #tpu.memory_space<vmem>>, %arg4: memref<128x128xf32, #tpu.memory_space<vmem>>, %arg5: memref<1x128xf32, #tpu.memory_space<vmem>>, %arg6: memref<1x128xf32, #tpu.memory_space<vmem>>, %arg7: memref<1x128xf32, #tpu.memory_space<vmem>>, %arg8: memref<3x128xf32, #tpu.memory_space<vmem>>) attributes {dimension_semantics = [#tpu.dimension_semantics<parallel>], iteration_bounds = array<i64: 2>, scalar_prefetch = 0 : i64, scratch_operands = 0 : i64, tpu.core_type = #tpu.core_type<tc>, window_params = [{transform_indices = @transform_0, window_bounds = array<i64: 128, 128>}, {transform_indices = @transform_1, window_bounds = array<i64: 128, 128>}, {transform_indices = @transform_2, window_bounds = array<i64: 128, 128>}, {transform_indices = @transform_3, window_bounds = array<i64: 128, 128>}, {pipeline_mode = #tpu.pipeline_mode<synchronous>, transform_indices = @transform_4, window_bounds = array<i64: 1, 128>}, {pipeline_mode = #tpu.pipeline_mode<synchronous>, transform_indices = @transform_5, window_bounds = array<i64: 1, 128>}, {pipeline_mode = #tpu.pipeline_mode<synchronous>, transform_indices = @transform_6, window_bounds = array<i64: 1, 128>}, {transform_indices = @transform_7, window_bounds = array<i64: 3, 128>}]} {
    %c0 = arith.constant 0 : index
    %c0_0 = arith.constant 0 : index
    %0 = vector.load %arg5[%c0, %c0_0] : memref<1x128xf32, #tpu.memory_space<vmem>>, vector<1x128xf32>
    %c0_1 = arith.constant 0 : index
    %c0_2 = arith.constant 0 : index
    %1 = vector.load %arg6[%c0_1, %c0_2] : memref<1x128xf32, #tpu.memory_space<vmem>>, vector<1x128xf32>
    %c0_3 = arith.constant 0 : index
    %c0_4 = arith.constant 0 : index
    %2 = vector.load %arg7[%c0_3, %c0_4] : memref<1x128xf32, #tpu.memory_space<vmem>>, vector<1x128xf32>
    %c0_5 = arith.constant 0 : index
    %c0_6 = arith.constant 0 : index
    %3 = vector.load %arg1[%c0_5, %c0_6] : memref<128x128xf32, #tpu.memory_space<vmem>>, vector<128x128xf32>
    %c0_7 = arith.constant 0 : index
    %c0_8 = arith.constant 0 : index
    %4 = vector.load %arg2[%c0_7, %c0_8] : memref<128x128xf32, #tpu.memory_space<vmem>>, vector<128x128xf32>
    %c0_9 = arith.constant 0 : index
    %c0_10 = arith.constant 0 : index
    %5 = vector.load %arg3[%c0_9, %c0_10] : memref<128x128xf32, #tpu.memory_space<vmem>>, vector<128x128xf32>
    %c0_11 = arith.constant 0 : index
    %c0_12 = arith.constant 0 : index
    %6 = vector.load %arg4[%c0_11, %c0_12] : memref<128x128xf32, #tpu.memory_space<vmem>>, vector<128x128xf32>
    %7 = vector.broadcast %1 : vector<1x128xf32> to vector<128x128xf32>
    %8 = arith.mulf %6, %7 : vector<128x128xf32>
    %9 = arith.subf %5, %8 : vector<128x128xf32>
    %10 = vector.broadcast %0 : vector<1x128xf32> to vector<128x128xf32>
    %11 = arith.mulf %9, %10 : vector<128x128xf32>
    %12 = arith.mulf %3, %11 : vector<128x128xf32>
    %cst = arith.constant dense<0.000000e+00> : vector<128xf32>
    %13 = vector.multi_reduction <add>, %12, %cst [1] : vector<128x128xf32> to vector<128xf32>
    %14 = arith.mulf %4, %11 : vector<128x128xf32>
    %cst_13 = arith.constant dense<0.000000e+00> : vector<128xf32>
    %15 = vector.multi_reduction <add>, %14, %cst_13 [1] : vector<128x128xf32> to vector<128xf32>
    %16 = arith.mulf %3, %4 : vector<128x128xf32>
    %17 = vector.broadcast %2 : vector<1x128xf32> to vector<128x128xf32>
    %18 = arith.mulf %16, %17 : vector<128x128xf32>
    %cst_14 = arith.constant dense<0.000000e+00> : vector<128xf32>
    %19 = vector.multi_reduction <add>, %18, %cst_14 [1] : vector<128x128xf32> to vector<128xf32>
    %20 = vector.shape_cast %19 : vector<128xf32> to vector<1x128xf32>
    %c0_15 = arith.constant 0 : index
    %c0_16 = arith.constant 0 : index
    %21 = vector.load %arg8[%c0_15, %c0_16] : memref<3x128xf32, #tpu.memory_space<vmem>>, vector<1x128xf32>
    tpu.vector_store %arg8[%c0_15, %c0_16], %20 {strides = array<i32>} : memref<3x128xf32, #tpu.memory_space<vmem>>, vector<1x128xf32>,
    %22 = vector.shape_cast %13 : vector<128xf32> to vector<1x128xf32>
    %c1 = arith.constant 1 : index
    %c0_17 = arith.constant 0 : index
    %23 = vector.load %arg8[%c1, %c0_17] : memref<3x128xf32, #tpu.memory_space<vmem>>, vector<1x128xf32>
    tpu.vector_store %arg8[%c1, %c0_17], %22 {strides = array<i32>} : memref<3x128xf32, #tpu.memory_space<vmem>>, vector<1x128xf32>,
    %24 = vector.shape_cast %15 : vector<128xf32> to vector<1x128xf32>
    %c2 = arith.constant 2 : index
    %c0_18 = arith.constant 0 : index
    %25 = vector.load %arg8[%c2, %c0_18] : memref<3x128xf32, #tpu.memory_space<vmem>>, vector<1x128xf32>
    tpu.vector_store %arg8[%c2, %c0_18], %24 {strides = array<i32>} : memref<3x128xf32, #tpu.memory_space<vmem>>, vector<1x128xf32>,
    return
  }
  func.func @transform_0(%arg0: i32) -> (i32, i32) {
    %c0_i32 = arith.constant 0 : i32
    %c0_i32_0 = arith.constant 0 : i32
    return %arg0, %c0_i32 : i32, i32
  }
  func.func @transform_1(%arg0: i32) -> (i32, i32) {
    %c0_i32 = arith.constant 0 : i32
    %c0_i32_0 = arith.constant 0 : i32
    return %arg0, %c0_i32 : i32, i32
  }
  func.func @transform_2(%arg0: i32) -> (i32, i32) {
    %c0_i32 = arith.constant 0 : i32
    %c0_i32_0 = arith.constant 0 : i32
    return %arg0, %c0_i32 : i32, i32
  }
  func.func @transform_3(%arg0: i32) -> (i32, i32) {
    %c0_i32 = arith.constant 0 : i32
    %c0_i32_0 = arith.constant 0 : i32
    return %arg0, %c0_i32 : i32, i32
  }
  func.func @transform_4(%arg0: i32) -> (i32, i32) {
    %c0_i32 = arith.constant 0 : i32
    %c0_i32_0 = arith.constant 0 : i32
    %c0_i32_1 = arith.constant 0 : i32
    return %c0_i32, %c0_i32_0 : i32, i32
  }
  func.func @transform_5(%arg0: i32) -> (i32, i32) {
    %c0_i32 = arith.constant 0 : i32
    %c0_i32_0 = arith.constant 0 : i32
    %c0_i32_1 = arith.constant 0 : i32
    return %c0_i32, %c0_i32_0 : i32, i32
  }
  func.func @transform_6(%arg0: i32) -> (i32, i32) {
    %c0_i32 = arith.constant 0 : i32
    %c0_i32_0 = arith.constant 0 : i32
    %c0_i32_1 = arith.constant 0 : i32
    return %c0_i32, %c0_i32_0 : i32, i32
  }
  func.func @transform_7(%arg0: i32) -> (i32, i32) {
    %c0_i32 = arith.constant 0 : i32
    %c0_i32_0 = arith.constant 0 : i32
    return %c0_i32, %arg0 : i32, i32
  }
}

</mosaic_0001>

<bundles_post_ra>
// kernel: tpu_custom_call.1
= control target key start
LH: loop header
LB: loop body
LE: loop exit
PB: predicated region body
PF: predicated region fallthrough
CT: control target
= control target key end

     0   :  { %12 = vsyncpa [#allocation3], 0  ;;  %s2246_s0 = inlined_call_operand.hbm [shape: f32[200,128], index: 0, kind: input, shape index: {}]   ;;  %s2247_s1 = inlined_call_operand.hbm [shape: f32[200,128], index: 1, kind: input, shape index: {}]   ;;  %s2248_s2 = inlined_call_operand.hbm [shape: f32[200,128], index: 2, kind: input, shape index: {}]   ;;  %s2249_s3 = inlined_call_operand.hbm [shape: f32[200,128], index: 3, kind: input, shape index: {}]   ;;  %s2250_s4 = inlined_call_operand.vmem [shape: f32[1,128], index: 4, kind: input, shape index: {}]   ;;  %s2251_s5 = inlined_call_operand.vmem [shape: f32[1,128], index: 5, kind: input, shape index: {}]   ;;  %s2252_s6 = inlined_call_operand.vmem [shape: f32[1,128], index: 6, kind: input, shape index: {}]   ;;  %s2253_s7 = inlined_call_operand.hbm [shape: f32[3,256], index: 7, kind: output, shape index: {}]  }
   0x1   :  { %14 = vsyncpa [#allocation3 + $0x1], 0 }
   0x2   :  { %15 = vsyncpa [#allocation6], 0 }
   0x3   :  { %17 = vsyncpa [#allocation6 + $0x1], 0 }
   0x4   :  { %18 = vsyncpa [#allocation9], 0 }
   0x5   :  { %20 = vsyncpa [#allocation9 + $0x1], 0 }
   0x6   :  { %21 = vsyncpa [#allocation4], 0 }
   0x7   :  { %23 = vsyncpa [#allocation4 + $0x1], 0  ;;  %s1554_s24 = smov 0   ;;  %s1556_s25 = smov 0  }
   0x8   :  { %s1558_s26 = smov 0   ;;  %s1560_s27 = smov 0  }
   0x9 LB: > { %s1575_s28 = sadd.s32 4294967295, %s1499_s27   ;;  %s1224_s29 = sadd.s32 4294967294, %s1499_s27   ;;  %s1499_s27 = sphi %s1560_s27, %s2267_s27   ;;  %s1495_s26 = sphi %s1558_s26, %s2271_s26   ;;  %s1491_s25 = sphi %s1556_s25, %s2270_s25   ;;  %s1487_s24 = sphi %s1554_s24, %s2269_s24  }
   0xa   : > { %s1579_s30 = sadd.s32 1, %s1499_s27   ;;  %s36_s8 = sadd.s32 1, %s1495_s26 }
   0xb   : > { %2258 = sst [smem:[#allocation15_spill]] %s1579_s30  ;;  %s33_s9 = ssub.s32 %s1499_s27, %s1579_s30 }
   0xc   : > { %p43_p0 = scmp.ne.s32.totalorder %s1495_s26, %s1491_s25  ;;  %p34_p1 = scmp.eq.s32.totalorder %s33_s9, 0 }
   0xd   : > { %p44_p2 = scmp.eq.s32.totalorder %s1499_s27, 0  ;;  %p49_p3 = scmp.ne.s32.totalorder %s1491_s25, %s1487_s24 }
   0xe   : > { %p50_p4 = scmp.eq.s32.totalorder %s1575_s28, 0  ;;  %p214_p7 = scmp.eq.s32.totalorder %s1575_s28, 1 }
   0xf   : > { %s1591_s10 = scalar_select %p34_p1, %s1495_s26, %s36_s8  }
  0x10   : > { %p1593_p5 = por %p44_p2, %p43_p0  ;;  %p1597_p6 = por %p50_p4, %p49_p3 }
  0x11   : > { %2259 = sst [smem:[#allocation16_spill]] %s1591_s10  ;;  %p220_p8 = scmp.eq.s32.totalorder %s1224_s29, 1 }
  0x12   : > { %p1602_p9 = por %p214_p7, %p43_p0  ;;  %p2256_p11 = scmp.ge.s32.totalorder %s1499_s27, 2 }
  0x13   : > { %p1606_p10 = por %p220_p8, %p49_p3 }
  0x14   : > { %s2262_s13 = scalar_select %p1602_p9, 1, 0 }
  0x15   : > { %s2263_s14 = scalar_select %p1606_p10, 1, 0 }
  0x16   : > { %245 = sbr.rel (%p2256_p11) target bundleno = 155 (0x9b), region = 28 }
  0x1b   : > { %248 = sbr.rel (!%p1593_p5) target bundleno = 59 (0x3b), region = 32  ;;  %s249_s15 = sand.u32 (%p1593_p5), 1, %s1495_s26  }
  0x1c   : > { %s1228_s16 = sshll.u32 (%p1593_p5), %s1499_s27, 4  ;;  %s1227_s17 = sshll.u32 (%p1593_p5), %s249_s15, 7 }
  0x1d   : > { %s255_s18 = ssub.s32 (%p1593_p5), 25, %s1228_s16  ;;  %s1620_s21 = scalar_lea.sflag (%p1593_p5), [#allocation3], %s249_s15 }
  0x1e   : > { %p256_p12 = scmp.lt.s32.totalorder (%p1593_p5), %s255_s18, 16  ;;  %s253_s22 = scalar_lea.vmem (%p1593_p5), [#allocation2], %s1227_s17 }
  0x20   : > { %s2273_s18 = smov (!%p256_p12, %s255_s18), 16 }
  0x21   : > { %s1617_s19 = sshll.u32 %s2273_s18, 7 }
  0x22   : > { %s260_s20 = ssub.s32 2048, %s1617_s19 }
  0x23   : > { %261 = vsyncadd %s1620_s21, %s260_s20  ;;  %p1230_p13 = scmp.ne.s32.totalorder %s1617_s19, 0  ;;  %s1268_s23 = sshll.u32 %s1499_s27, 11 }
  0x24   : > { %s1628_s9 = scalar_lea.hbm %s2246_s0, %s1268_s23  ;;  %s266_s16 = sshll.u32 %s253_s22, 4  ;;  %s1630_s16 = int_to_ptr.vmem [resolvable:$true] %s266_s16 }
  0x25   : > { %s1323_s15 = scalar_lea.hbm %s1628_s9, %s1617_s19  ;;  %s1327_s20 = scalar_lea.hbm %s2246_s0, 3200 }
  0x26   : > { %p1324_p0 = scmp.ne.s32.totalorder %s1628_s9, %s1323_s15  ;;  %p1328_p3 = scmp.lt.s32.totalorder %s1628_s9, %s2246_s0 }
  0x27   : > { %p1329_p4 = scmp.lt.s32.totalorder %s1327_s20, %s1323_s15 }
  0x28   : > { %p1325_p1 = pnand %p1324_p0, %p1230_p13 }
  0x29   : > { %p1330_p7 = por %p1329_p4, %p1328_p3 }
  0x2a   : > { %p1326_p2 = pneg %p1325_p1 }
  0x2c   : > { %p1331_p8 = pnand %p1330_p7, %p1326_p2 }
  0x2e   : > { %1334 = shalt.err (!%p1331_p8)
}
  0x2f   : > { %s1335_s22 = scalar_lea.vmem %s1630_s16, %s1617_s19  ;;  %s1501_s23 = smov [#allocation2]  }
  0x30   : > { %p1336_p12 = scmp.ne.s32.totalorder %s1630_s16, %s1335_s22  ;;  %s1339_s29 = sshll.u32 %s1501_s23, 4  ;;  %s1340_s29 = int_to_ptr.vmem [resolvable:$false] %s1339_s29 }
  0x31   : > { %s1341_s8 = scalar_lea.vmem %s1340_s29, 4096  ;;  %p1342_p11 = scmp.lt.s32.totalorder %s1630_s16, %s1340_s29 }
  0x32   : > { %p1337_p0 = pnand %p1336_p12, %p1230_p13  ;;  %p1343_p10 = scmp.lt.s32.totalorder %s1341_s8, %s1335_s22 }
  0x34   : > { %p1338_p1 = pneg %p1337_p0  ;;  %p1344_p9 = por %p1343_p10, %p1342_p11 }
  0x36   : > { %p1345_p3 = pnand %p1344_p9, %p1338_p1 }
  0x38   : > { %1348 = shalt.err (!%p1345_p3)
}
  0x39   : > { %s1502_s30 = smov 128   ;;  %s1503_s10 = smov 8  }
  0x3a   : > { %272 = dma.hbm_to_vmem [thread:$0]  (%p1230_p13), %s1628_s9, %s1617_s19, %s1630_s16, %s1620_s21, %s1502_s30, %s1502_s30, %s1503_s10  }
  0x3b PF: > { %275 = sbr.rel (!%p1593_p5) target bundleno = 91 (0x5b), region = 36  ;;  %s276_s15 = sand.u32 (%p1593_p5), 1, %s1499_s27  }
  0x3c   : > { %s278_s17 = sand.u32 (%p1593_p5), 1, %s1495_s26   ;;  %s1235_s20 = sshll.u32 (%p1593_p5), %s1499_s27, 4 }
  0x3d   : > { %s1234_s18 = sshll.u32 (%p1593_p5), %s278_s17, 7  ;;  %s282_s22 = ssub.s32 (%p1593_p5), 25, %s1235_s20 }
  0x3e   : > { %p283_p9 = scmp.lt.s32.totalorder (%p1593_p5), %s282_s22, 16  ;;  %s1664_s8 = scalar_lea.sflag (%p1593_p5), [#allocation6], %s276_s15 }
  0x3f   : > { %s280_s19 = scalar_lea.vmem (%p1593_p5), [#allocation5], %s1234_s18 }
  0x40   : > { %s2275_s22 = smov (!%p283_p9, %s282_s22), 16 }
  0x41   : > { %s1661_s23 = sshll.u32 %s2275_s22, 7 }
  0x42   : > { %s287_s29 = ssub.s32 2048, %s1661_s23 }
  0x43   : > { %288 = vsyncadd %s1664_s8, %s287_s29  ;;  %p1237_p10 = scmp.ne.s32.totalorder %s1661_s23, 0  ;;  %s1269_s21 = sshll.u32 %s1499_s27, 11 }
  0x44   : > { %s1672_s30 = scalar_lea.hbm %s2247_s1, %s1269_s21  ;;  %s293_s10 = sshll.u32 %s280_s19, 4  ;;  %s1674_s10 = int_to_ptr.vmem [resolvable:$true] %s293_s10 }
  0x45   : > { %s1349_s15 = scalar_lea.hbm %s1672_s30, %s1661_s23  ;;  %s1353_s20 = scalar_lea.hbm %s2247_s1, 3200 }
  0x46   : > { %p1350_p11 = scmp.ne.s32.totalorder %s1672_s30, %s1349_s15  ;;  %p1354_p4 = scmp.lt.s32.totalorder %s1672_s30, %s2247_s1 }
  0x47   : > { %p1355_p7 = scmp.lt.s32.totalorder %s1353_s20, %s1349_s15 }
  0x48   : > { %p1351_p13 = pnand %p1350_p11, %p1237_p10 }
  0x49   : > { %p1356_p8 = por %p1355_p7, %p1354_p4 }
  0x4a   : > { %p1352_p2 = pneg %p1351_p13 }
  0x4c   : > { %p1357_p12 = pnand %p1356_p8, %p1352_p2 }
  0x4e   : > { %1360 = shalt.err (!%p1357_p12)
}
  0x4f   : > { %s1361_s19 = scalar_lea.vmem %s1674_s10, %s1661_s23  ;;  %s1504_s21 = smov [#allocation5]  }
  0x50   : > { %p1362_p0 = scmp.ne.s32.totalorder %s1674_s10, %s1361_s19  ;;  %s1365_s9 = sshll.u32 %s1504_s21, 4  ;;  %s1366_s9 = int_to_ptr.vmem [resolvable:$false] %s1365_s9 }
  0x51   : > { %s1367_s16 = scalar_lea.vmem %s1366_s9, 4096  ;;  %p1368_p9 = scmp.lt.s32.totalorder %s1674_s10, %s1366_s9 }
  0x52   : > { %p1363_p1 = pnand %p1362_p0, %p1237_p10  ;;  %p1369_p11 = scmp.lt.s32.totalorder %s1367_s16, %s1361_s19 }
  0x54   : > { %p1364_p3 = pneg %p1363_p1  ;;  %p1370_p13 = por %p1369_p11, %p1368_p9 }
  0x56   : > { %p1371_p4 = pnand %p1370_p13, %p1364_p3 }
  0x58   : > { %1374 = shalt.err (!%p1371_p4)
}
  0x59   : > { %s1505_s15 = smov 128   ;;  %s1506_s17 = smov 8  }
  0x5a   : > { %299 = dma.hbm_to_vmem [thread:$0]  (%p1237_p10), %s1672_s30, %s1661_s23, %s1674_s10, %s1664_s8, %s1505_s15, %s1505_s15, %s1506_s17  }
  0x5b PF: > { %302 = sbr.rel (!%p1593_p5) target bundleno = 123 (0x7b), region = 40  ;;  %s303_s18 = sand.u32 (%p1593_p5), 1, %s1499_s27  }
  0x5c   : > { %s305_s20 = sand.u32 (%p1593_p5), 1, %s1495_s26   ;;  %s1242_s29 = sshll.u32 (%p1593_p5), %s1499_s27, 4 }
  0x5d   : > { %s1241_s22 = sshll.u32 (%p1593_p5), %s305_s20, 7  ;;  %s309_s19 = ssub.s32 (%p1593_p5), 25, %s1242_s29 }
  0x5e   : > { %p310_p2 = scmp.lt.s32.totalorder (%p1593_p5), %s309_s19, 16  ;;  %s1708_s16 = scalar_lea.sflag (%p1593_p5), [#allocation6], %s303_s18 }
  0x5f   : > { %s307_s23 = scalar_lea.vmem (%p1593_p5), [#allocation7], %s1241_s22 }
  0x60   : > { %s2277_s19 = smov (!%p310_p2, %s309_s19), 16 }
  0x61   : > { %s1705_s21 = sshll.u32 %s2277_s19, 7 }
  0x62   : > { %s314_s9 = ssub.s32 2048, %s1705_s21 }
  0x63   : > { %315 = vsyncadd %s1708_s16, %s314_s9  ;;  %p1244_p10 = scmp.ne.s32.totalorder %s1705_s21, 0  ;;  %s1270_s8 = sshll.u32 %s1499_s27, 11 }
  0x64   : > { %s1716_s15 = scalar_lea.hbm %s2248_s2, %s1270_s8  ;;  %s320_s17 = sshll.u32 %s307_s23, 4  ;;  %s1718_s17 = int_to_ptr.vmem [resolvable:$true] %s320_s17 }
  0x65   : > { %s1375_s18 = scalar_lea.hbm %s1716_s15, %s1705_s21  ;;  %s1379_s29 = scalar_lea.hbm %s2248_s2, 3200 }
  0x66   : > { %p1376_p7 = scmp.ne.s32.totalorder %s1716_s15, %s1375_s18  ;;  %p1380_p0 = scmp.lt.s32.totalorder %s1716_s15, %s2248_s2 }
  0x67   : > { %p1381_p1 = scmp.lt.s32.totalorder %s1379_s29, %s1375_s18 }
  0x68   : > { %p1377_p8 = pnand %p1376_p7, %p1244_p10 }
  0x69   : > { %p1382_p3 = por %p1381_p1, %p1380_p0 }
  0x6a   : > { %p1378_p12 = pneg %p1377_p8 }
  0x6c   : > { %p1383_p9 = pnand %p1382_p3, %p1378_p12 }
  0x6e   : > { %1386 = shalt.err (!%p1383_p9)
}
  0x6f   : > { %s1387_s23 = scalar_lea.vmem %s1718_s17, %s1705_s21  ;;  %s1507_s8 = smov [#allocation7]  }
  0x70   : > { %p1388_p11 = scmp.ne.s32.totalorder %s1718_s17, %s1387_s23  ;;  %s1391_s30 = sshll.u32 %s1507_s8, 4  ;;  %s1392_s30 = int_to_ptr.vmem [resolvable:$false] %s1391_s30 }
  0x71   : > { %s1393_s10 = scalar_lea.vmem %s1392_s30, 4096  ;;  %p1394_p2 = scmp.lt.s32.totalorder %s1718_s17, %s1392_s30 }
  0x72   : > { %p1389_p13 = pnand %p1388_p11, %p1244_p10  ;;  %p1395_p7 = scmp.lt.s32.totalorder %s1393_s10, %s1387_s23 }
  0x74   : > { %p1390_p4 = pneg %p1389_p13  ;;  %p1396_p8 = por %p1395_p7, %p1394_p2 }
  0x76   : > { %p1397_p0 = pnand %p1396_p8, %p1390_p4 }
  0x78   : > { %1400 = shalt.err (!%p1397_p0)
}
  0x79   : > { %s1508_s18 = smov 128   ;;  %s1509_s20 = smov 8  }
  0x7a   : > { %326 = dma.hbm_to_vmem [thread:$0]  (%p1244_p10), %s1716_s15, %s1705_s21, %s1718_s17, %s1708_s16, %s1508_s18, %s1508_s18, %s1509_s20  }
  0x7b PF: > { %329 = sbr.rel (!%p1593_p5) target bundleno = 155 (0x9b), region = 44  ;;  %s330_s22 = sand.u32 (%p1593_p5), 1, %s1495_s26  }
  0x7c   : > { %s1249_s29 = sshll.u32 (%p1593_p5), %s1499_s27, 4  ;;  %s1248_s19 = sshll.u32 (%p1593_p5), %s330_s22, 7 }
  0x7d   : > { %s336_s9 = ssub.s32 (%p1593_p5), 25, %s1249_s29  ;;  %s1751_s30 = scalar_lea.sflag (%p1593_p5), [#allocation9], %s330_s22 }
  0x7e   : > { %p337_p12 = scmp.lt.s32.totalorder (%p1593_p5), %s336_s9, 16  ;;  %s334_s21 = scalar_lea.vmem (%p1593_p5), [#allocation8], %s1248_s19 }
  0x80   : > { %s2279_s9 = smov (!%p337_p12, %s336_s9), 16 }
  0x81   : > { %s1748_s23 = sshll.u32 %s2279_s9, 7 }
  0x82   : > { %s341_s8 = ssub.s32 2048, %s1748_s23 }
  0x83   : > { %342 = vsyncadd %s1751_s30, %s341_s8  ;;  %p1251_p5 = scmp.ne.s32.totalorder %s1748_s23, 0  ;;  %s1271_s11 = sshll.u32 %s1499_s27, 11 }
  0x84   : > { %s1759_s17 = scalar_lea.hbm %s2249_s3, %s1271_s11  ;;  %s347_s10 = sshll.u32 %s334_s21, 4  ;;  %s1761_s10 = int_to_ptr.vmem [resolvable:$true] %s347_s10 }
  0x85   : > { %s1401_s18 = scalar_lea.hbm %s1759_s17, %s1748_s23  ;;  %s1405_s29 = scalar_lea.hbm %s2249_s3, 3200 }
  0x86   : > { %p1402_p10 = scmp.ne.s32.totalorder %s1759_s17, %s1401_s18  ;;  %p1406_p9 = scmp.lt.s32.totalorder %s1759_s17, %s2249_s3 }
  0x87   : > { %p1407_p11 = scmp.lt.s32.totalorder %s1405_s29, %s1401_s18 }
  0x88   : > { %p1403_p1 = pnand %p1402_p10, %p1251_p5 }
  0x89   : > { %p1408_p13 = por %p1407_p11, %p1406_p9 }
  0x8a   : > { %p1404_p3 = pneg %p1403_p1 }
  0x8c   : > { %p1409_p4 = pnand %p1408_p13, %p1404_p3 }
  0x8e   : > { %1412 = shalt.err (!%p1409_p4)
}
  0x8f   : > { %s1413_s8 = scalar_lea.vmem %s1761_s10, %s1748_s23  ;;  %s1510_s21 = smov [#allocation8]  }
  0x90   : > { %p1414_p2 = scmp.ne.s32.totalorder %s1761_s10, %s1413_s8  ;;  %s1417_s11 = sshll.u32 %s1510_s21, 4  ;;  %s1418_s11 = int_to_ptr.vmem [resolvable:$false] %s1417_s11 }
  0x91   : > { %s1419_s16 = scalar_lea.vmem %s1418_s11, 4096  ;;  %p1420_p0 = scmp.lt.s32.totalorder %s1761_s10, %s1418_s11 }
  0x92   : > { %p1415_p7 = pnand %p1414_p2, %p1251_p5  ;;  %p1421_p12 = scmp.lt.s32.totalorder %s1419_s16, %s1413_s8 }
  0x94   : > { %p1416_p8 = pneg %p1415_p7  ;;  %p1422_p10 = por %p1421_p12, %p1420_p0 }
  0x96   : > { %p1423_p1 = pnand %p1422_p10, %p1416_p8 }
  0x98   : > { %1426 = shalt.err (!%p1423_p1)
}
  0x99   : > { %s1511_s15 = smov 128   ;;  %s1512_s18 = smov 8  }
  0x9a   : > { %353 = dma.hbm_to_vmem [thread:$0]  (%p1251_p5), %s1759_s17, %s1748_s23, %s1761_s10, %s1751_s30, %s1511_s15, %s1511_s15, %s1512_s18  }
  0x9b PF: > { %p1255_p3 = scmp.ge.s32.totalorder %s1499_s27, 1  ;;  %p355_p9 = scmp.lt.s32.totalorder %s1499_s27, 3 }
  0x9d   : > { %p356_p11 = pnand %p1255_p3, %p355_p9 }
  0x9e   : > { %s1790_s20 = sand.u32 (!%p356_p11), 1, %s1491_s25  }
  0x9f   : > { %359 = sbr.rel (%p356_p11) target bundleno = 427 (0x1ab), region = 48  ;;  %s1256_s22 = sshll.u32 (!%p356_p11), %s1790_s20, 7 }
  0xa0   : > { %s362_s29 = scalar_lea.sflag (!%p356_p11), [#allocation3], %s1790_s20  ;;  %s1794_s19 = scalar_lea.vmem (!%p356_p11), [#allocation2], %s1256_s22 }
  0xa4   : > { %1470 = dma.done.wait (%p1597_p6), %s362_s29, 2048  }
  0xa5   : > { %1472 = vsyncadd (%p1597_p6), %s362_s29, 4294965248  ;;  %s370_s23 = sand.u32 1, %s1575_s28   ;;  %s1801_s17 = scalar_lea.vmem [#allocation5], %s1256_s22 }
  0xa6   : > { %s371_s30 = scalar_lea.sflag [#allocation6], %s370_s23 }
  0xa7   : > { %1474 = dma.done.wait (%p1597_p6), %s371_s30, 4096  }
  0xa8   : > { %1476 = vsyncadd (%p1597_p6), %s371_s30, 4294963200  ;;  %s1807_s10 = scalar_lea.vmem [#allocation7], %s1256_s22  ;;  %s389_s9 = scalar_lea.sflag [#allocation9], %s1790_s20 }
  0xa9   : > { %s1810_s8 = scalar_lea.vmem [#allocation8], %s1256_s22 }
  0xaa   : > { %1478 = dma.done.wait (%p1597_p6), %s389_s9, 2048  }
  0xab   : > { %1480 = vsyncadd (%p1597_p6), %s389_s9, 4294965248  ;;  %v1819_v0 = vld [vmem:[%s2252_s6] ss:$0 sm:$0xff]  ;;  %v462_v1 = vld [vmem:[%s1794_s19 + $0x8] sm:$0xff]  ;;  %vm778_vm0 = vcmask 130112   ;;  %vm785_vm1 = vcmask 195712  }
  0xac   : > { %v478_v2 = vld [vmem:[%s1801_s17 + $0x8] sm:$0xff]  ;;  %v461_v4 = vld [vmem:[%s1794_s19] sm:$0xff]  ;;  %v463_v6 = vld [vmem:[%s1794_s19 + $0x10] sm:$0xff]  ;;  %vm792_vm2 = vcmask 261312   ;;  %vm799_vm3 = vcmask 326912   ;;  %vm806_vm4 = vcmask 392512  }
  0xad   : > { %v682_v3 = vmul.f32 %v478_v2, %v462_v1  ;;  %v477_v5 = vld [vmem:[%s1801_s17] sm:$0xff]  ;;  %v479_v8 = vld [vmem:[%s1801_s17 + $0x10] sm:$0xff]  ;;  %v494_v18 = vld [vmem:[%s1807_s10 + $0x8] sm:$0xff]  ;;  %vm813_vm5 = vcmask 458112   ;;  %vm820_vm6 = vcmask 523712   ;;  %vm827_vm7 = vcmask 589312  }
  0xae   : > { %v681_v7 = vmul.f32 %v477_v5, %v461_v4  ;;  %v1830_v9 = vld [vmem:[%s2251_s5] ss:$0 sm:$0xff]  ;;  %v683_v11 = vmul.f32 %v479_v8, %v463_v6  ;;  %v495_v14 = vld [vmem:[%s1807_s10 + $0x10] sm:$0xff]  ;;  %v510_v19 = vld [vmem:[%s1810_s8 + $0x8] sm:$0xff]  ;;  %vm834_vm8 = vcmask 654912   ;;  %vm841_vm9 = vcmask 720512  }
  0xaf   : > { %v704_v10 = vmul.f32 %v1819_v0, %v682_v3  ;;  %v493_v12 = vld [vmem:[%s1807_s10] sm:$0xff]  ;;  %v511_v17 = vld [vmem:[%s1810_s8 + $0x10] sm:$0xff]  ;;  %v532_v23 = vmul.f32 %v1830_v9, %v510_v19  ;;  %v496_v24 = vld [vmem:[%s1807_s10 + $0x18] sm:$0xff]  ;;  %vm848_vm10 = vcmask 786112   ;;  %vm855_vm11 = vcmask 851712   ;;  %s1260_s22 = sshll.u32 %s1790_s20, 2 }
  0xb0   : > { %v509_v13 = vld [vmem:[%s1810_s8] sm:$0xff]  ;;  %v703_v15 = vmul.f32 %v1819_v0, %v681_v7  ;;  %v705_v20 = vmul.f32 %v1819_v0, %v683_v11  ;;  %v533_v22 = vmul.f32 %v1830_v9, %v511_v17  ;;  %v512_v25 = vld [vmem:[%s1810_s8 + $0x18] sm:$0xff]  ;;  %v514_v44 = vld [vmem:[%s1810_s8 + $0x28] sm:$0xff]  ;;  %vm862_vm12 = vcmask 917312   ;;  %s437_s29 = scalar_lea.vmem [#allocation10], %s1260_s22  ;;  %p2264_p5 = scmp.ne.s32.totalorder %s2262_s13, 0 }
  0xb1   : > { %v531_v16 = vmul.f32 %v1830_v9, %v509_v13  ;;  %721 = vadd.xlane.f32.xlu1 %v704_v10  ;;  %v1845_v21 = vld [vmem:[%s2250_s4] ss:$0 sm:$0xff]  ;;  %v534_v27 = vmul.f32 %v1830_v9, %v512_v25  ;;  %v548_v29 = vsub.f32 %v494_v18, %v532_v23  ;;  %v464_v35 = vld [vmem:[%s1794_s19 + $0x18] sm:$0xff]  ;;  %v536_v49 = vmul.f32 %v1830_v9, %v514_v44  ;;  %v498_v50 = vld [vmem:[%s1807_s10 + $0x28] sm:$0xff]  ;;  %s1088_s23 = sshll.u32 %s437_s29, 4  ;;  %s1089_s23 = int_to_ptr.vmem [resolvable:$true] %s1088_s23 }
  0xb2   : > { %719 = vadd.xlane.f32.xlu0 %v703_v15  ;;  %v549_v28 = vsub.f32 %v495_v14, %v533_v22  ;;  %v513_v37 = vld [vmem:[%s1810_s8 + $0x20] sm:$0xff]  ;;  %v480_v42 = vld [vmem:[%s1801_s17 + $0x18] sm:$0xff]  ;;  %v522_v57 = vld [vmem:[%s1810_s8 + $0x68] sm:$0xff]  ;;  %vm869_vm13 = vcmask 982912   ;;  %vm876_vm14 = vcmask 1048512   ;;  %s1427_s9 = scalar_lea.vmem %s1089_s23, 64 }
  0xb3   : > { %v547_v26 = vsub.f32 %v493_v12, %v531_v16  ;;  %v550_v31 = vsub.f32 %v496_v24, %v534_v27  ;;  %v570_v33 = vmul.f32 %v1845_v21, %v548_v29  ;;  %v535_v41 = vmul.f32 %v1830_v9, %v513_v37  ;;  %v497_v43 = vld [vmem:[%s1807_s10 + $0x20] sm:$0xff]  ;;  %v515_v59 = vld [vmem:[%s1810_s8 + $0x30] sm:$0xff]  ;;  %v506_v61 = vld [vmem:[%s1807_s10 + $0x68] sm:$0xff]  ;;  %p1428_p6 = scmp.ne.s32.totalorder %s1089_s23, %s1427_s9 }
  0xb4   : > { %v571_v32 = vmul.f32 %v1845_v21, %v549_v28  ;;  %v684_v47 = vmul.f32 %v480_v42, %v464_v35  ;;  %v521_v51 = vld [vmem:[%s1810_s8 + $0x60] sm:$0xff]  ;;  %v552_v55 = vsub.f32 %v498_v50, %v536_v49  ;;  %v523_v62 = vld [vmem:[%s1810_s8 + $0x70] sm:$0xff]  ;;  %v544_v3 = vmul.f32 %v1830_v9, %v522_v57  ;;  %v516_v11 = vld [vmem:[%s1810_s8 + $0x38] sm:$0xff] }
  0xb5   : > { %v569_v30 = vmul.f32 %v1845_v21, %v547_v26  ;;  %723 = vadd.xlane.f32.xlu1 %v705_v20  ;;  %v572_v36 = vmul.f32 %v1845_v21, %v550_v31  ;;  %v586_v39 = vmul.f32 %v570_v33, %v462_v1  ;;  %v634_v46 = vmul.f32 %v570_v33, %v478_v2  ;;  %v505_v56 = vld [vmem:[%s1807_s10 + $0x60] sm:$0xff]  ;;  %v499_v12 = vld [vmem:[%s1807_s10 + $0x30] sm:$0xff]  ;;  %v508_v17 = vld [vmem:[%s1807_s10 + $0x78] sm:$0xff]  ;;  %p1429_p13 = pnand %p1428_p6, %p2264_p5 }
  0xb6   : > { %v587_v38 = vmul.f32 %v571_v32, %v463_v6  ;;  %v551_v48 = vsub.f32 %v497_v43, %v535_v41  ;;  %v635_v52 = vmul.f32 %v571_v32, %v479_v8  ;;  %v706_v53 = vmul.f32 %v1819_v0, %v684_v47  ;;  %v481_v58 = vld [vmem:[%s1801_s17 + $0x20] sm:$0xff]  ;;  %v466_v6 = vld [vmem:[%s1794_s19 + $0x28] sm:$0xff]  ;;  %v507_v15 = vld [vmem:[%s1807_s10 + $0x70] sm:$0xff] }
  0xb7   : > { %v585_v34 = vmul.f32 %v569_v30, %v461_v4  ;;  %v588_v40 = vmul.f32 %v572_v36, %v464_v35  ;;  %v633_v45 = vmul.f32 %v569_v30, %v477_v5  ;;  %v543_v60 = vmul.f32 %v1830_v9, %v521_v51  ;;  %v465_v1 = vld [vmem:[%s1794_s19 + $0x20] sm:$0xff]  ;;  %v524_v4 = vld [vmem:[%s1810_s8 + $0x78] sm:$0xff]  ;;  %v482_v8 = vld [vmem:[%s1801_s17 + $0x28] sm:$0xff]  ;;  %p1430_p4 = pneg %p1429_p13 }
  0xb8   : > { %v573_v54 = vmul.f32 %v1845_v21, %v551_v48  ;;  %v636_v63 = vmul.f32 %v572_v36, %v480_v42  ;;  %v574_v7 = vmul.f32 %v1845_v21, %v552_v55  ;;  %v537_v10 = vmul.f32 %v1830_v9, %v515_v59  ;;  %v500_v29 = vld [vmem:[%s1807_s10 + $0x38] sm:$0xff]  ;;  %v483_v36 = vld [vmem:[%s1801_s17 + $0x30] sm:$0xff]  ;;  %v517_v37 = vld [vmem:[%s1810_s8 + $0x40] sm:$0xff] }
  0xb9   : > { %601 = vadd.xlane.f32.xlu0 %v585_v34  ;;  %605 = vadd.xlane.f32.xlu1 %v587_v38  ;;  %v559_v2 = vsub.f32 %v505_v56, %v543_v60  ;;  %v560_v14 = vsub.f32 %v506_v61, %v544_v3  ;;  %v545_v16 = vmul.f32 %v1830_v9, %v523_v62  ;;  %v468_v41 = vld [vmem:[%s1794_s19 + $0x38] sm:$0xff]  ;;  %v519_v59 = vld [vmem:[%s1810_s8 + $0x50] sm:$0xff]  ;;  %v469_v62 = vld [vmem:[%s1794_s19 + $0x40] sm:$0xff] }
  0xba   : > { %v637_v5 = vmul.f32 %v573_v54, %v481_v58  ;;  %v685_v18 = vmul.f32 %v481_v58, %v465_v1  ;;  %v546_v19 = vmul.f32 %v1830_v9, %v524_v4  ;;  %v589_v20 = vmul.f32 %v573_v54, %v465_v1  ;;  %v484_v44 = vld [vmem:[%s1801_s17 + $0x38] sm:$0xff]  ;;  %v485_v58 = vld [vmem:[%s1801_s17 + $0x40] sm:$0xff]  ;;  %v486_v3 = vld [vmem:[%s1801_s17 + $0x48] sm:$0xff] }
  0xbb   : > { %v1884_v13 = vmul.f32 %v1845_v21, %v559_v2  ;;  %v686_v22 = vmul.f32 %v482_v8, %v466_v6  ;;  %v538_v23 = vmul.f32 %v1830_v9, %v516_v11  ;;  %v1892_v24 = vmul.f32 %v1845_v21, %v560_v14  ;;  %v503_v4 = vld [vmem:[%s1807_s10 + $0x50] sm:$0xff]  ;;  %v504_v14 = vld [vmem:[%s1807_s10 + $0x58] sm:$0xff] }
  0xbc   : > { %v590_v25 = vmul.f32 %v574_v7, %v466_v6  ;;  %v553_v26 = vsub.f32 %v499_v12, %v537_v10  ;;  %v561_v27 = vsub.f32 %v507_v15, %v545_v16  ;;  %v562_v28 = vsub.f32 %v508_v17, %v546_v19  ;;  %v487_v19 = vld [vmem:[%s1801_s17 + $0x50] sm:$0xff] }
  0xbd   : > { %603 = vadd.xlane.f32.xlu0 %v586_v39  ;;  %607 = vadd.xlane.f32.xlu1 %v588_v40  ;;  %v707_v32 = vmul.f32 %v1819_v0, %v685_v18  ;;  %v708_v33 = vmul.f32 %v1819_v0, %v686_v22  ;;  %v554_v35 = vsub.f32 %v500_v29, %v538_v23  ;;  %v467_v40 = vld [vmem:[%s1794_s19 + $0x30] sm:$0xff] }
  0xbe   : > { %v1896_v30 = vmul.f32 %v1845_v21, %v561_v27  ;;  %v1899_v31 = vmul.f32 %v1845_v21, %v562_v28  ;;  %v575_v34 = vmul.f32 %v1845_v21, %v553_v26  ;;  %v638_v38 = vmul.f32 %v574_v7, %v482_v8  ;;  %v471_v23 = vld [vmem:[%s1794_s19 + $0x50] sm:$0xff]  ;;  %v488_v26 = vld [vmem:[%s1801_s17 + $0x58] sm:$0xff] }
  0xbf   : > { %v576_v42 = vmul.f32 %v1845_v21, %v554_v35  ;;  %v539_v43 = vmul.f32 %v1830_v9, %v517_v37  ;;  %v687_v48 = vmul.f32 %v483_v36, %v467_v40  ;;  %v688_v50 = vmul.f32 %v484_v44, %v468_v41  ;;  %v489_v35 = vld [vmem:[%s1801_s17 + $0x60] sm:$0xff] }
  0xc0   : > { %v639_v39 = vmul.f32 %v575_v34, %v483_v36  ;;  %v591_v47 = vmul.f32 %v575_v34, %v467_v40  ;;  %v541_v2 = vmul.f32 %v1830_v9, %v519_v59  ;;  %v689_v7 = vmul.f32 %v485_v58, %v469_v62  ;;  %v473_v37 = vld [vmem:[%s1794_s19 + $0x60] sm:$0xff] }
  0xc1   : > { %649 = vadd.xlane.f32.xlu0 %v633_v45  ;;  %651 = vadd.xlane.f32.xlu1 %v634_v46  ;;  %v501_v45 = vld [vmem:[%s1807_s10 + $0x40] sm:$0xff]  ;;  %v518_v46 = vld [vmem:[%s1810_s8 + $0x48] sm:$0xff]  ;;  %v592_v49 = vmul.f32 %v576_v42, %v468_v41  ;;  %v709_v54 = vmul.f32 %v1819_v0, %v687_v48  ;;  %v710_v55 = vmul.f32 %v1819_v0, %v688_v50  ;;  %v492_v50 = vld [vmem:[%s1801_s17 + $0x78] sm:$0xff] }
  0xc2   : > { %v555_v51 = vsub.f32 %v501_v45, %v539_v43  ;;  %v640_v60 = vmul.f32 %v576_v42, %v484_v44  ;;  %v557_v11 = vsub.f32 %v503_v4, %v541_v2  ;;  %v711_v15 = vmul.f32 %v1819_v0, %v689_v7 }
  0xc3   : > { %v691_v28 = vmul.f32 %v487_v19, %v471_v23  ;;  %v645_v36 = vmul.f32 %v1884_v13, %v489_v35  ;;  %v597_v40 = vmul.f32 %v1884_v13, %v473_v37  ;;  %v693_v41 = vmul.f32 %v489_v35, %v473_v37  ;;  %v475_v13 = vld [vmem:[%s1794_s19 + $0x70] sm:$0xff] }
  0xc4   : > { %v577_v56 = vmul.f32 %v1845_v21, %v555_v51  ;;  %v579_v17 = vmul.f32 %v1845_v21, %v557_v11  ;;  %v599_v51 = vmul.f32 %v1896_v30, %v475_v13 }
  0xc5   : > { %653 = vadd.xlane.f32.xlu0 %v635_v52  ;;  %725 = vadd.xlane.f32.xlu1 %v706_v53  ;;  %v540_v52 = vmul.f32 %v1830_v9, %v518_v46  ;;  %v502_v53 = vld [vmem:[%s1807_s10 + $0x48] sm:$0xff]  ;;  %v715_v44 = vmul.f32 %v1819_v0, %v693_v41  ;;  %v491_v46 = vld [vmem:[%s1801_s17 + $0x70] sm:$0xff] }
  0xc6   : > { %v641_v61 = vmul.f32 %v577_v56, %v485_v58  ;;  %v593_v6 = vmul.f32 %v577_v56, %v469_v62  ;;  %v643_v22 = vmul.f32 %v579_v17, %v487_v19  ;;  %v595_v27 = vmul.f32 %v579_v17, %v471_v23 }
  0xc7   : > { %v556_v57 = vsub.f32 %v502_v53, %v540_v52  ;;  %v647_v48 = vmul.f32 %v1896_v30, %v491_v46  ;;  %v695_v52 = vmul.f32 %v491_v46, %v475_v13  ;;  %v648_v56 = vmul.f32 %v1899_v31, %v492_v50 }
  0xc9   : > { %655 = vadd.xlane.f32.xlu0 %v636_v63  ;;  %657 = vadd.xlane.f32.xlu1 %v637_v5  ;;  %v470_v63 = vld [vmem:[%s1794_s19 + $0x48] sm:$0xff]  ;;  %v578_v1 = vmul.f32 %v1845_v21, %v556_v57  ;;  %v520_v5 = vld [vmem:[%s1810_s8 + $0x58] sm:$0xff]  ;;  %v767_v57 = vlaneseq  ;;  %s1513_s8 = smov [#allocation10]  }
  0xca   : > { %v690_v10 = vmul.f32 %v486_v3, %v470_v63  ;;  %v542_v12 = vmul.f32 %v1830_v9, %v520_v5  ;;  %s1431_s21 = sshll.u32 %s1513_s8, 4  ;;  %s1432_s21 = int_to_ptr.vmem [resolvable:$false] %s1431_s21 }
  0xcb   : > { %v594_v8 = vmul.f32 %v578_v1, %v470_v63  ;;  %v1959_v58 = vand.u32 127, %v767_v57  ;;  %v1961_v30 = vshrl.u32 %v767_v57, 7  ;;  %s1433_s11 = scalar_lea.vmem %s1432_s21, 128  ;;  %p1434_p2 = scmp.lt.s32.totalorder %s1089_s23, %s1432_s21 }
  0xcc   : > { %v712_v16 = vmul.f32 %v1819_v0, %v690_v10  ;;  %v558_v18 = vsub.f32 %v504_v14, %v542_v12  ;;  %p1435_p7 = scmp.lt.s32.totalorder %s1433_s11, %s1427_s9 }
  0xcd   : > { %609 = vadd.xlane.f32.xlu0 %v589_v20  ;;  %611 = vadd.xlane.f32.xlu1 %v590_v25  ;;  %v642_v20 = vmul.f32 %v578_v1, %v486_v3  ;;  %v472_v25 = vld [vmem:[%s1794_s19 + $0x58] sm:$0xff]  ;;  %v773_v59 = vadd.s32 4294967288, %v1959_v58  ;;  %v771_v62 = vsub.s32 %v1959_v58, %v1961_v30 }
  0xce   : > { %v580_v9 = vmul.f32 %v1845_v21, %v558_v18  ;;  %p1436_p8 = por %p1435_p7, %p1434_p2 }
  0xd0   : > { %v596_v29 = vmul.f32 %v580_v9, %v472_v25  ;;  %v644_v21 = vmul.f32 %v580_v9, %v488_v26  ;;  %p1437_p0 = pnand %p1436_p8, %p1430_p4 }
  0xd1   : > { %727 = vadd.xlane.f32.xlu0 %v707_v32  ;;  %729 = vadd.xlane.f32.xlu1 %v708_v33  ;;  %v692_v32 = vmul.f32 %v488_v26, %v472_v25  ;;  %v713_v33 = vmul.f32 %v1819_v0, %v691_v28 }
  0xd3   : > { %v714_v34 = vmul.f32 %v1819_v0, %v692_v32 }
  0xd5   : > { %659 = vadd.xlane.f32.xlu0 %v638_v38  ;;  %661 = vadd.xlane.f32.xlu1 %v639_v39  ;;  %v474_v38 = vld [vmem:[%s1794_s19 + $0x68] sm:$0xff] }
  0xd6   : > { %v490_v39 = vld [vmem:[%s1801_s17 + $0x68] sm:$0xff]  ;;  %v598_v42 = vmul.f32 %v1892_v24, %v474_v38 }
  0xd7   : > { %v694_v43 = vmul.f32 %v490_v39, %v474_v38 }
  0xd9   : > { %613 = vadd.xlane.f32.xlu0 %v591_v47  ;;  %615 = vadd.xlane.f32.xlu1 %v592_v49  ;;  %v716_v45 = vmul.f32 %v1819_v0, %v694_v43  ;;  %v646_v47 = vmul.f32 %v1892_v24, %v490_v39  ;;  %v476_v49 = vld [vmem:[%s1794_s19 + $0x78] sm:$0xff]  ;;  %s1265_s19 = sshll.u32 %s1575_s28, 6  ;;  %s1075_s28 = scalar_lea.sflag [#allocation4], %s1790_s20 }
  0xda   : > { %v600_v53 = vmul.f32 %v1899_v31, %v476_v49  ;;  %s2208_s10 = scalar_lea.hbm %s2253_s7, %s1265_s19 }
  0xdd   : > { %731 = vadd.xlane.f32.xlu0 %v709_v54  ;;  %733 = vadd.xlane.f32.xlu1 %v710_v55  ;;  %v696_v54 = vmul.f32 %v492_v50, %v476_v49  ;;  %v717_v55 = vmul.f32 %v1819_v0, %v695_v52  ;;  %v794_v52 = vadd.s32 4294967264, %v1959_v58 }
  0xdf   : > { %v718_v24 = vmul.f32 %v1819_v0, %v696_v54  ;;  %v808_v54 = vadd.s32 4294967248, %v1959_v58 }
  0xe1   : > { %663 = vadd.xlane.f32.xlu0 %v640_v60  ;;  %665 = vadd.xlane.f32.xlu1 %v641_v61  ;;  %v776_v60 = vsub.s32 %v773_v59, %v1961_v30  ;;  %v780_v61 = vadd.s32 4294967280, %v1959_v58  ;;  %v797_v59 = vsub.s32 %v794_v52, %v1961_v30 }
  0xe3   : > { %v1969_v1 = vsub.s32 %v780_v61, %v1961_v30  ;;  %v829_v61 = vadd.s32 4294967224, %v1959_v58 }
  0xe5   : > { %617 = vadd.xlane.f32.xlu0 %v593_v6  ;;  %619 = vadd.xlane.f32.xlu1 %v594_v8  ;;  %v787_v6 = vadd.s32 4294967272, %v1959_v58 }
  0xe7   : > { %v1978_v11 = vsub.s32 %v787_v6, %v1961_v30 }
  0xe9   : > { %735 = vadd.xlane.f32.xlu0 %v711_v15  ;;  %737 = vadd.xlane.f32.xlu1 %v712_v16 }
  0xed   : > { %667 = vadd.xlane.f32.xlu0 %v642_v20  ;;  %669 = vadd.xlane.f32.xlu1 %v643_v22 }
  0xf1   : > { %621 = vadd.xlane.f32.xlu0 %v595_v27  ;;  %623 = vadd.xlane.f32.xlu1 %v596_v29 }
  0xf5   : > { %739 = vadd.xlane.f32.xlu0 %v713_v33  ;;  %741 = vadd.xlane.f32.xlu1 %v714_v34 }
  0xf9   : > { %671 = vadd.xlane.f32.xlu0 %v644_v21  ;;  %673 = vadd.xlane.f32.xlu1 %v645_v36 }
  0xfd   : > { %625 = vadd.xlane.f32.xlu0 %v597_v40  ;;  %627 = vadd.xlane.f32.xlu1 %v598_v42 }
 0x101   : > { %743 = vadd.xlane.f32.xlu0 %v715_v44  ;;  %745 = vadd.xlane.f32.xlu1 %v716_v45 }
 0x105   : > { %675 = vadd.xlane.f32.xlu0 %v646_v47  ;;  %677 = vadd.xlane.f32.xlu1 %v647_v48 }
 0x109   : > { %629 = vadd.xlane.f32.xlu0 %v599_v51  ;;  %631 = vadd.xlane.f32.xlu1 %v600_v53  ;;  %v801_v53 = vadd.s32 4294967256, %v1959_v58 }
 0x10d   : > { %747 = vadd.xlane.f32.xlu0 %v717_v55  ;;  %749 = vadd.xlane.f32.xlu1 %v718_v24  ;;  %v815_v55 = vadd.s32 4294967240, %v1959_v58 }
 0x111   : > { %679 = vadd.xlane.f32.xlu0 %v648_v56  ;;  %v822_v56 = vadd.s32 4294967232, %v1959_v58 }
 0x13a   : > { %v722_v0 = vpop.xlane.xlu1 %721 }
 0x13b   : > { %v777_v63 = vrot.slane %v722_v0, %v776_v60  ;;  %v720_v31 = vpop.xlane.xlu0 %719  ;;  %v2056_v0 = vsub.s32 %v815_v55, %v1961_v30 }
 0x13c   : > { %v772_v2 = vrot.slane %v720_v31, %v771_v62 }
 0x13e   : > { %v779_v3 = vsel %vm778_vm0, %v777_v63, %v772_v2  ;;  %v724_v4 = vpop.xlane.xlu1 %723  ;;  %v836_v63 = vadd.s32 4294967216, %v1959_v58  ;;  %v2062_v2 = vsub.s32 %v822_v56, %v1961_v30 }
 0x13f   : > { %v784_v5 = vrot.slane %v724_v4, %v1969_v1  ;;  %v850_v4 = vadd.s32 4294967200, %v1959_v58 }
 0x141   : > { %v1975_v7 = vsel %vm785_vm1, %v784_v5, %v779_v3  ;;  %v843_v3 = vadd.s32 4294967208, %v1959_v58 }
 0x142   : > { %v602_v8 = vpop.xlane.xlu0 %601  ;;  %v606_v10 = vpop.xlane.xlu1 %605 }
 0x143   : > { %v908_v12 = vrot.slane %v606_v10, %v1969_v1  ;;  %v899_v15 = vrot.slane %v602_v8, %v771_v62  ;;  %v857_v8 = vadd.s32 4294967192, %v1959_v58  ;;  %v864_v10 = vadd.s32 4294967184, %v1959_v58 }
 0x146   : > { %v604_v14 = vpop.xlane.xlu0 %603  ;;  %v608_v17 = vpop.xlane.xlu1 %607 }
 0x147   : > { %v903_v16 = vrot.slane %v604_v14, %v776_v60  ;;  %v913_v18 = vrot.slane %v608_v17, %v1978_v11  ;;  %v2075_v14 = vsub.s32 %v829_v61, %v1961_v30 }
 0x149   : > { %v904_v19 = vsel %vm778_vm0, %v903_v16, %v899_v15  ;;  %v871_v15 = vadd.s32 4294967176, %v1959_v58 }
 0x14a   : > { %v909_v20 = vsel %vm785_vm1, %v908_v12, %v904_v19  ;;  %v650_v22 = vpop.xlane.xlu0 %649  ;;  %v652_v9 = vpop.xlane.xlu1 %651 }
 0x14b   : > { %v1985_v23 = vsel %vm792_vm2, %v913_v18, %v909_v20  ;;  %v996_v25 = vrot.slane %v650_v22, %v771_v62  ;;  %v1000_v26 = vrot.slane %v652_v9, %v776_v60  ;;  %v2049_v60 = vsub.s32 %v801_v53, %v1961_v30 }
 0x14c   : > { %v2053_v62 = vsub.s32 %v808_v54, %v1961_v30  ;;  %v2088_v20 = vsub.s32 %v843_v3, %v1961_v30  ;;  %v2091_v22 = vsub.s32 %v850_v4, %v1961_v30 }
 0x14d   : > { %v1988_v27 = vsel %vm778_vm0, %v1000_v26, %v996_v25  ;;  %v2100_v25 = vsub.s32 %v857_v8, %v1961_v30  ;;  %v2103_v26 = vsub.s32 %v864_v10, %v1961_v30 }
 0x14e   : > { %v1990_v28 = vpop.xlane.xlu0 %653  ;;  %v1992_v29 = vpop.xlane.xlu1 %725 }
 0x14f   : > { %v1005_v6 = vrot.slane %v1990_v28, %v1969_v1  ;;  %v791_v16 = vrot.slane %v1992_v29, %v1978_v11  ;;  %v2082_v1 = vsub.s32 %v836_v63, %v1961_v30 }
 0x152   : > { %v1994_v32 = vpop.xlane.xlu0 %655  ;;  %v1996_v33 = vpop.xlane.xlu1 %657 }
 0x153   : > { %v1010_v12 = vrot.slane %v1994_v32, %v1978_v11  ;;  %v1015_v17 = vrot.slane %v1996_v33, %v797_v59  ;;  %v1006_v11 = vsel %vm785_vm1, %v1005_v6, %v1988_v27  ;;  %v2110_v27 = vsub.s32 %v871_v15, %v1961_v30 }
 0x154   : > { %v793_v33 = vsel %vm792_vm2, %v791_v16, %v1975_v7 }
 0x155   : > { %v1011_v28 = vsel %vm792_vm2, %v1010_v12, %v1006_v11 }
 0x156   : > { %v1998_v34 = vpop.xlane.xlu0 %609  ;;  %v2000_v35 = vpop.xlane.xlu1 %611 }
 0x157   : > { %v918_v19 = vrot.slane %v1998_v34, %v797_v59  ;;  %v923_v9 = vrot.slane %v2000_v35, %v2049_v60  ;;  %v1016_v34 = vsel %vm799_vm3, %v1015_v17, %v1011_v28 }
 0x15a   : > { %v2002_v21 = vpop.xlane.xlu0 %727  ;;  %v2004_v36 = vpop.xlane.xlu1 %729 }
 0x15b   : > { %v798_v29 = vrot.slane %v2002_v21, %v797_v59  ;;  %v805_v35 = vrot.slane %v2004_v36, %v2049_v60  ;;  %v919_v21 = vsel %vm799_vm3, %v918_v19, %v1985_v23 }
 0x15c   : > { %v924_v36 = vsel %vm806_vm4, %v923_v9, %v919_v21 }
 0x15e   : > { %v2006_v37 = vpop.xlane.xlu0 %659  ;;  %v2008_v38 = vpop.xlane.xlu1 %661 }
 0x15f   : > { %v1020_v30 = vrot.slane %v2006_v37, %v2049_v60  ;;  %v800_v37 = vsel %vm799_vm3, %v798_v29, %v793_v33 }
 0x160   : > { %v807_v59 = vsel %vm806_vm4, %v805_v35, %v800_v37 }
 0x161   : > { %v1021_v61 = vsel %vm806_vm4, %v1020_v30, %v1016_v34 }
 0x162   : > { %v2010_v39 = vpop.xlane.xlu0 %613  ;;  %v2012_v40 = vpop.xlane.xlu1 %615 }
 0x163   : > { %v928_v32 = vrot.slane %v2010_v39, %v2053_v62  ;;  %v933_v52 = vrot.slane %v2012_v40, %v2056_v0  ;;  %v1025_v40 = vrot.slane %v2008_v38, %v2053_v62 }
 0x165   : > { %v1026_v3 = vsel %vm813_vm5, %v1025_v40, %v1021_v61 }
 0x166   : > { %v2014_v41 = vpop.xlane.xlu0 %731  ;;  %v2016_v42 = vpop.xlane.xlu1 %733 }
 0x167   : > { %v812_v39 = vrot.slane %v2014_v41, %v2053_v62  ;;  %v819_v55 = vrot.slane %v2016_v42, %v2056_v0  ;;  %v929_v41 = vsel %vm813_vm5, %v928_v32, %v924_v36 }
 0x168   : > { %v934_v38 = vsel %vm820_vm6, %v933_v52, %v929_v41 }
 0x169   : > { %v814_v62 = vsel %vm813_vm5, %v812_v39, %v807_v59 }
 0x16a   : > { %v2018_v43 = vpop.xlane.xlu0 %663  ;;  %v2020_v44 = vpop.xlane.xlu1 %665  ;;  %v821_v4 = vsel %vm820_vm6, %v819_v55, %v814_v62 }
 0x16b   : > { %v1030_v6 = vrot.slane %v2018_v43, %v2056_v0  ;;  %v1035_v15 = vrot.slane %v2020_v44, %v2062_v2 }
 0x16d   : > { %v1031_v28 = vsel %vm820_vm6, %v1030_v6, %v1026_v3 }
 0x16e   : > { %v2022_v45 = vpop.xlane.xlu0 %617  ;;  %v2024_v46 = vpop.xlane.xlu1 %619  ;;  %v1036_v32 = vsel %vm827_vm7, %v1035_v15, %v1031_v28 }
 0x16f   : > { %v938_v7 = vrot.slane %v2022_v45, %v2062_v2  ;;  %v943_v23 = vrot.slane %v2024_v46, %v2075_v14 }
 0x172   : > { %v2026_v47 = vpop.xlane.xlu0 %735  ;;  %v2028_v48 = vpop.xlane.xlu1 %737 }
 0x173   : > { %v826_v45 = vrot.slane %v2026_v47, %v2062_v2  ;;  %v833_v42 = vrot.slane %v2028_v48, %v2075_v14  ;;  %v939_v47 = vsel %vm827_vm7, %v938_v7, %v934_v38 }
 0x174   : > { %v944_v48 = vsel %vm834_vm8, %v943_v23, %v939_v47 }
 0x175   : > { %v828_v8 = vsel %vm827_vm7, %v826_v45, %v821_v4 }
 0x176   : > { %v2030_v13 = vpop.xlane.xlu0 %667  ;;  %v2032_v49 = vpop.xlane.xlu1 %669  ;;  %v835_v16 = vsel %vm834_vm8, %v833_v42, %v828_v8 }
 0x177   : > { %v1040_v43 = vrot.slane %v2030_v13, %v2075_v14  ;;  %v1045_v44 = vrot.slane %v2032_v49, %v2082_v1 }
 0x179   : > { %v1041_v35 = vsel %vm834_vm8, %v1040_v43, %v1036_v32 }
 0x17a   : > { %v2034_v50 = vpop.xlane.xlu0 %621  ;;  %v2036_v51 = vpop.xlane.xlu1 %623  ;;  %v1046_v21 = vsel %vm841_vm9, %v1045_v44, %v1041_v35 }
 0x17b   : > { %v948_v56 = vrot.slane %v2034_v50, %v2082_v1  ;;  %v953_v46 = vrot.slane %v2036_v51, %v2088_v20 }
 0x17d   : > { %v949_v10 = vsel %vm841_vm9, %v948_v56, %v944_v48 }
 0x17e   : > { %v2042_v24 = vpop.xlane.xlu0 %739  ;;  %v2045_v57 = vpop.xlane.xlu1 %741  ;;  %v954_v17 = vsel %vm848_vm10, %v953_v46, %v949_v10 }
 0x17f   : > { %v840_v12 = vrot.slane %v2042_v24, %v2082_v1 }
 0x181   : > { %v842_v13 = vsel %vm841_vm9, %v840_v12, %v835_v16 }
 0x182   : > { %v2059_v31 = vpop.xlane.xlu0 %671  ;;  %v2066_v5 = vpop.xlane.xlu1 %673 }
 0x183   : > { %v1050_v14 = vrot.slane %v2059_v31, %v2088_v20  ;;  %v1055_v49 = vrot.slane %v2066_v5, %v2091_v22 }
 0x185   : > { %v1051_v39 = vsel %vm848_vm10, %v1050_v14, %v1046_v21 }
 0x186   : > { %v2084_v18 = vpop.xlane.xlu0 %625  ;;  %v2093_v58 = vpop.xlane.xlu1 %627 }
 0x187   : > { %v958_v50 = vrot.slane %v2084_v18, %v2091_v22  ;;  %v963_v51 = vrot.slane %v2093_v58, %v2100_v25  ;;  %v847_v18 = vrot.slane %v2045_v57, %v2088_v20 }
 0x189   : > { %v959_v0 = vsel %vm855_vm11, %v958_v50, %v954_v17  ;;  %v849_v33 = vsel %vm848_vm10, %v847_v18, %v842_v13 }
 0x18a   : > { %v744_v53 = vpop.xlane.xlu0 %743  ;;  %v746_v54 = vpop.xlane.xlu1 %745  ;;  %v964_v2 = vsel %vm862_vm12, %v963_v51, %v959_v0 }
 0x18b   : > { %v854_v58 = vrot.slane %v744_v53, %v2091_v22  ;;  %v861_v9 = vrot.slane %v746_v54, %v2100_v25 }
 0x18d   : > { %v856_v52 = vsel %vm855_vm11, %v854_v58, %v849_v33 }
 0x18e   : > { %v676_v60 = vpop.xlane.xlu0 %675  ;;  %v678_v63 = vpop.xlane.xlu1 %677  ;;  %v863_v30 = vsel %vm862_vm12, %v861_v9, %v856_v52 }
 0x18f   : > { %v1060_v53 = vrot.slane %v676_v60, %v2100_v25  ;;  %v1065_v5 = vrot.slane %v678_v63, %v2103_v26  ;;  %v1056_v25 = vsel %vm855_vm11, %v1055_v49, %v1051_v39 }
 0x191   : > { %v1061_v40 = vsel %vm862_vm12, %v1060_v53, %v1056_v25 }
 0x192   : > { %v630_v19 = vpop.xlane.xlu0 %629  ;;  %v632_v11 = vpop.xlane.xlu1 %631  ;;  %v1066_v55 = vsel %vm869_vm13, %v1065_v5, %v1061_v40 }
 0x193   : > { %v968_v24 = vrot.slane %v630_v19, %v2103_v26  ;;  %v973_v57 = vrot.slane %v632_v11, %v2110_v27 }
 0x195   : > { %v969_v29 = vsel %vm869_vm13, %v968_v24, %v964_v2 }
 0x196   : > { %v974_v1 = vsel %vm876_vm14, %v973_v57, %v969_v29  ;;  %v748_v34 = vpop.xlane.xlu0 %747  ;;  %v750_v20 = vpop.xlane.xlu1 %749 }
 0x197   : > { %976 = vst [vmem:[%s437_s29 + $0x1] sm:$0x1] %v974_v1  ;;  %v868_v31 = vrot.slane %v748_v34, %v2103_v26  ;;  %v875_v22 = vrot.slane %v750_v20, %v2110_v27 }
 0x199   : > { %v870_v7 = vsel %vm869_vm13, %v868_v31, %v863_v30 }
 0x19a   : > { %v877_v54 = vsel %vm876_vm14, %v875_v22, %v870_v7  ;;  %v680_v36 = vpop.xlane.xlu0 %679 }
 0x19b   : > { %879 = vst [vmem:[%s437_s29] sm:$0x1] %v877_v54  ;;  %v1070_v26 = vrot.slane %v680_v36, %v2110_v27 }
 0x19d   : > { %v1071_v23 = vsel %vm876_vm14, %v1070_v26, %v1066_v55 }
 0x19e   : > { %1073 = vst [vmem:[%s437_s29 + $0x2] sm:$0x1] %v1071_v23 }
 0x19f   : > { %1440 = shalt.err (!%p1437_p0)
}
 0x1a0   : > { %s1441_s12 = scalar_lea.hbm %s2208_s10, 64  ;;  %s1445_s15 = scalar_lea.hbm %s2253_s7, 128 }
 0x1a1   : > { %p1442_p12 = scmp.ne.s32.totalorder %s2208_s10, %s1441_s12  ;;  %p1446_p3 = scmp.lt.s32.totalorder %s2208_s10, %s2253_s7 }
 0x1a2   : > { %p1447_p9 = scmp.lt.s32.totalorder %s1445_s15, %s1441_s12 }
 0x1a3   : > { %p1443_p10 = pnand %p1442_p12, %p2264_p5 }
 0x1a4   : > { %p1448_p11 = por %p1447_p9, %p1446_p3 }
 0x1a5   : > { %p1444_p1 = pneg %p1443_p10 }
 0x1a7   : > { %p1449_p6 = pnand %p1448_p11, %p1444_p1 }
 0x1a9   : > { %1452 = shalt.err (!%p1449_p6)
}
 0x1aa   : > { %1276 = dma.vmem_to_hbm [thread:$0]  (%p2264_p5), %s1089_s23, 64, %s2208_s10, %s1075_s28  }
 0x1ab PF: > { %s1100_s29 = sand.u32 1, %s1487_s24   ;;  %p2265_p13 = scmp.ne.s32.totalorder %s2263_s14, 0 }
 0x1ac   : > { %p2266_p4 = scmp.ge.s32.totalorder %s1499_s27, 2  ;;  %s1101_s19 = scalar_lea.sflag [#allocation4], %s1100_s29 }
 0x1ae   : > { %p1279_p2 = pnand %p2266_p4, %p2265_p13 }
 0x1b0   : > { %p1280_p7 = pneg %p1279_p2 }
 0x1b2   : > { %1482 = dma.done.wait (%p1280_p7), %s1101_s19, 64  }
 0x1b3   : > { %1484 = vsyncadd (%p1280_p7), %s1101_s19, 4294967232  ;;  %s2267_s27 = sld [smem:[#allocation15_spill]]  ;;  %s2269_s24 = smov %s1491_s25 }
 0x1b4   : > { %s2268_s30 = sld [smem:[#allocation16_spill]]  ;;  %s2270_s25 = smov %s1495_s26 }
 0x1b9   : > { %p26_p8 = scmp.ge.s32.totalorder %s2267_s27, 4  }
 0x1ba   : > { %s2271_s26 = smov %s2268_s30 }
 0x1bb   :  { %28 = sbr.rel (!%p26_p8) target bundleno = 9 (0x9), region = 130 }
 0x1c0   :  { %1106 = vsyncpa [#allocation3], 1 }
 0x1c1   :  { %1108 = vsyncpa [#allocation3 + $0x1], 1 }
 0x1c2   :  { %1109 = vsyncpa [#allocation6], 1 }
 0x1c3   :  { %1111 = vsyncpa [#allocation6 + $0x1], 1 }
 0x1c4   :  { %1112 = vsyncpa [#allocation9], 1 }
 0x1c5   :  { %1114 = vsyncpa [#allocation9 + $0x1], 1 }
 0x1c6   :  { %1115 = vsyncpa [#allocation4], 1 }
 0x1c7   :  { %1117 = vsyncpa [#allocation4 + $0x1], 1 }

</bundles_post_ra>
